<compile_context>
chip_gen: v7x
topology: tpu7x:2x2x1
jax: 0.10.0
libtpu: 0.0.40
codegen_flags: <defaults>
</compile_context>

<pallas_src>
import jax
import jax.numpy as jnp
from jax import lax
from jax.experimental import pallas as pl
from jax.experimental.pallas import tpu as pltpu


_VMEM_BUDGET = 48 * 1024 * 1024  # keep double-buffered working set under v7x's 64 MiB


def _round_up(a, m):
    return ((a + m - 1) // m) * m


def cossim_kernel(x_ref, cn_ref, o_ref):
    # MXU first: contract the shared feature (last) axis of both operands,
    # bf16 operands with f32 accumulation.
    xb = x_ref[...].astype(jnp.bfloat16)
    logits = lax.dot_general(
        xb, cn_ref[...],
        dimension_numbers=(((1,), (1,)), ((), ())),
        preferred_element_type=jnp.float32,
    )
    # Activation row 1/||x|| in f32 (XLU reduce + EUP rsqrt), applied to the
    # OUTPUT tile: keeps the matmul critical path clear and costs tb*tn
    # multiplies instead of tb*nfeat.  No epsilon (matches PyTorch).
    xf = x_ref[...].astype(jnp.float32)
    inv_norm = lax.rsqrt(jnp.sum(xf * xf, axis=-1, keepdims=True))
    o_ref[...] = (logits * inv_norm).astype(o_ref.dtype)


def cossim(x, centroids, *, block_b=512, block_n=256):
    """Cosine-similarity logits, equivalent to the PyTorch CosSim.forward."""
    B, nfeat = x.shape
    nclass, nfeat_c = centroids.shape
    assert nfeat == nfeat_c

    # Weights side: normalize once per call in f32, then cast to bf16 (MXU
    # native on v5e/v6e/v7x; halves centroid HBM + VMEM bytes).
    c32 = centroids.astype(jnp.float32)
    cn = (c32 * lax.rsqrt(jnp.sum(c32 * c32, axis=-1, keepdims=True))
          ).astype(jnp.bfloat16)

    # Class (N) tiling: tn is either the full nclass or a 128/256-multiple,
    # keeping output stores lane-dense and centroid VMEM bounded.
    tn = nclass if nclass <= block_n else block_n
    n_ct = pl.cdiv(nclass, tn)

    # Batch (B) tiling.  Guarantee >= 2 parallel grid tiles when the class
    # axis has only one, so both v7x TensorCores get work.
    if B > block_b:
        tb = block_b
    elif n_ct == 1 and B > 8:
        tb = _round_up(pl.cdiv(B, 2), 8)
    else:
        tb = B

    # Shrink the batch tile until the double-buffered working set fits the
    # VMEM budget (x tile in its own dtype, bf16 centroid tile, f32 out tile).
    def vmem_need(tb_, tn_):
        return 2 * (tb_ * nfeat * x.dtype.itemsize
                    + tn_ * nfeat * cn.dtype.itemsize
                    + tb_ * tn_ * 4)

    while vmem_need(tb, tn) > _VMEM_BUDGET and tb > 64:
        tb = max(64, _round_up(tb // 2, 8))

    n_bt = pl.cdiv(B, tb)

    # Raise the scoped VMEM limit above the 16/32 MiB default when needed.
    vmem_limit = int(min(max(vmem_need(tb, tn) + (4 << 20), 32 << 20), 96 << 20))

    cost = pl.CostEstimate(
        flops=2 * B * nclass * nfeat,
        transcendentals=B * n_ct,
        bytes_accessed=int(B * nfeat * x.dtype.itemsize
                           + n_bt * nclass * nfeat * cn.dtype.itemsize
                           + B * nclass * 4),
    )

    return pl.pallas_call(
        cossim_kernel,
        out_shape=jax.ShapeDtypeStruct((B, nclass), jnp.float32),
        grid=(n_bt, n_ct),
        in_specs=[
            pl.BlockSpec((tb, nfeat), lambda i, j: (i, 0)),
            pl.BlockSpec((tn, nfeat), lambda i, j: (j, 0)),
        ],
        out_specs=pl.BlockSpec((tb, tn), lambda i, j: (i, j)),
        compiler_params=pltpu.CompilerParams(
            dimension_semantics=("parallel", "parallel"),
            vmem_limit_bytes=vmem_limit),
        cost_estimate=cost,
    )(x, cn)


def cossim_ref(x, centroids):
    """Pure-JAX reference mirroring the PyTorch forward (f32)."""
    xn = x / jnp.linalg.norm(x, axis=-1, keepdims=True)
    cnn = centroids / jnp.linalg.norm(centroids, axis=-1, keepdims=True)
    return xn @ cnn.T


if __name__ == "__main__":
    # Module config: nfeat=32 features, nclass=16 classes.
    nfeat, nclass = 32, 16

    key = jax.random.PRNGKey(0)
    kx, kc, kx2 = jax.random.split(key, 3)

    # Deterministic "codebook" (torch.randn(nclass, nfeat) analogue).
    centroids = jax.random.normal(kc, (nclass, nfeat), dtype=jnp.float32)

    # Case 1: toy batch (single grid tile).
    x = jax.random.normal(kx, (8, nfeat), dtype=jnp.float32)
    logits = cossim(x, centroids)
    jax.block_until_ready(logits)
    ref = cossim_ref(x, centroids)
    assert logits.shape == (8, nclass)
    err = float(jnp.max(jnp.abs(logits - ref)))
    # bf16 MXU operands (f32 accumulation) => looser tolerance than pure f32.
    assert err < 2e-2, f"case1 max abs err {err}"

    # Case 2: batch exercising the 2-tile parallel B grid + ragged last block.
    x2 = jax.random.normal(kx2, (40, nfeat), dtype=jnp.float32)
    logits2 = cossim(x2, centroids)
    jax.block_until_ready(logits2)
    ref2 = cossim_ref(x2, centroids)
    assert logits2.shape == (40, nclass)
    err2 = float(jnp.max(jnp.abs(logits2 - ref2)))
    assert err2 < 2e-2, f"case2 max abs err {err2}"

    print("KERNEL_OK")
</pallas_src>

<mosaic_0001>
module attributes {stable_mosaic.version = 11 : i64} {
  func.func @cossim_kernel(%arg0: i32, %arg1: i32, %arg2: memref<8x32xf32, #tpu.memory_space<vmem>>, %arg3: memref<16x32xbf16, #tpu.memory_space<vmem>>, %arg4: memref<8x16xf32, #tpu.memory_space<vmem>>) attributes {dimension_semantics = [#tpu.dimension_semantics<parallel>, #tpu.dimension_semantics<parallel>], iteration_bounds = array<i64: 1, 1>, scalar_prefetch = 0 : i64, scratch_operands = 0 : i64, tpu.core_type = #tpu.core_type<tc>, window_params = [{transform_indices = @transform_0, window_bounds = array<i64: 8, 32>}, {transform_indices = @transform_1, window_bounds = array<i64: 16, 32>}, {transform_indices = @transform_2, window_bounds = array<i64: 8, 16>}]} {
    %c0 = arith.constant 0 : index
    %c0_0 = arith.constant 0 : index
    %0 = vector.load %arg2[%c0, %c0_0] : memref<8x32xf32, #tpu.memory_space<vmem>>, vector<8x32xf32>
    %1 = arith.truncf %0 : vector<8x32xf32> to vector<8x32xbf16>
    %c0_1 = arith.constant 0 : index
    %c0_2 = arith.constant 0 : index
    %2 = vector.load %arg3[%c0_1, %c0_2] : memref<16x32xbf16, #tpu.memory_space<vmem>>, vector<16x32xbf16>
    %cst = arith.constant dense<0.000000e+00> : vector<8x16xf32>
    %3 = tpu.matmul %1, %2, %cst {dimension_numbers = #tpu.dot_dimension_numbers<[1], [1], [0], [0], [0, 0, 1, 0], [], []>} : vector<8x32xbf16>, vector<16x32xbf16>, vector<8x16xf32> -> vector<8x16xf32>
    %c0_3 = arith.constant 0 : index
    %c0_4 = arith.constant 0 : index
    %4 = vector.load %arg2[%c0_3, %c0_4] : memref<8x32xf32, #tpu.memory_space<vmem>>, vector<8x32xf32>
    %5 = arith.mulf %4, %4 : vector<8x32xf32>
    %cst_5 = arith.constant dense<0.000000e+00> : vector<8xf32>
    %6 = vector.multi_reduction <add>, %5, %cst_5 [1] : vector<8x32xf32> to vector<8xf32>
    %7 = vector.shape_cast %6 : vector<8xf32> to vector<8x1xf32>
    %8 = math.rsqrt %7 : vector<8x1xf32>
    %9 = vector.broadcast %8 : vector<8x1xf32> to vector<8x16xf32>
    %10 = arith.mulf %3, %9 : vector<8x16xf32>
    %c0_6 = arith.constant 0 : index
    %c0_7 = arith.constant 0 : index
    %11 = vector.load %arg4[%c0_6, %c0_7] : memref<8x16xf32, #tpu.memory_space<vmem>>, vector<8x16xf32>
    tpu.vector_store %arg4[%c0_6, %c0_7], %10 {strides = array<i32>} : memref<8x16xf32, #tpu.memory_space<vmem>>, vector<8x16xf32>,
    return
  }
  func.func @transform_0(%arg0: i32, %arg1: i32) -> (i32, i32) {
    %c0_i32 = arith.constant 0 : i32
    %c0_i32_0 = arith.constant 0 : i32
    return %arg0, %c0_i32 : i32, i32
  }
  func.func @transform_1(%arg0: i32, %arg1: i32) -> (i32, i32) {
    %c0_i32 = arith.constant 0 : i32
    %c0_i32_0 = arith.constant 0 : i32
    return %arg1, %c0_i32 : i32, i32
  }
  func.func @transform_2(%arg0: i32, %arg1: i32) -> (i32, i32) {
    %c0_i32 = arith.constant 0 : i32
    return %arg0, %arg1 : i32, i32
  }
}

</mosaic_0001>

<bundles_post_ra>
// kernel: tpu_custom_call.1
= control target key start
LH: loop header
LB: loop body
LE: loop exit
PB: predicated region body
PF: predicated region fallthrough
CT: control target
= control target key end

     0   :  { %7 = vsyncpa [#allocation3], 0  ;;  %s276_s0 = inlined_call_operand.hbm [shape: f32[8,32], index: 0, kind: input, shape index: {}]   ;;  %s277_s1 = inlined_call_operand.hbm [shape: bf16[16,32], index: 1, kind: input, shape index: {}]   ;;  %s278_s2 = inlined_call_operand.hbm [shape: f32[8,16], index: 2, kind: output, shape index: {}]  }
   0x1   :  { %8 = vsyncpa [#allocation6], 0 }
   0x2   :  { %9 = vsyncpa [#allocation4], 0  ;;  %s211_s9 = smov [#allocation2]   ;;  %s212_s11 = smov [#allocation5]  }
   0x3   :  { %s16_s10 = sshll.u32 %s211_s9, 4  ;;  %s25_s12 = sshll.u32 %s212_s11, 4  ;;  %s17_s10 = int_to_ptr.vmem [resolvable:$true] %s16_s10  ;;  %s233_s12 = int_to_ptr.vmem [resolvable:$true] %s25_s12 }
   0x4   :  { %s139_s15 = scalar_lea.hbm %s276_s0, 128 }
   0x5   :  { %p140_p0 = scmp.ne.s32.totalorder %s276_s0, %s139_s15  ;;  %p143_p1 = scmp.lt.u32.totalorder %s139_s15, %s276_s0 }
   0x7   :  { %p145_p2 = pnand %p143_p1, %p140_p0 }
   0x9   :  { %148 = shalt.err (!%p145_p2)
}
   0xa   :  { %s149_s20 = scalar_lea.vmem %s17_s10, 128  ;;  %p154_p4 = scmp.lt.s32.totalorder %s17_s10, %s17_s10 }
   0xb   :  { %p150_p3 = scmp.ne.s32.totalorder %s17_s10, %s149_s20  ;;  %p155_p5 = scmp.lt.s32.totalorder %s149_s20, %s149_s20 }
   0xd   :  { %p156_p6 = por %p155_p5, %p154_p4 }
   0xf   :  { %p157_p7 = pnand %p156_p6, %p150_p3 }
  0x11   :  { %160 = shalt.err (!%p157_p7)
}
  0x12   :  { %19 = dma.hbm_to_vmem [thread:$0]  %s276_s0, 128, %s17_s10, [#allocation3]  }
  0x13   :  { %s161_s25 = scalar_lea.hbm %s277_s1, 128 }
  0x14   :  { %p162_p8 = scmp.ne.s32.totalorder %s277_s1, %s161_s25  ;;  %p165_p9 = scmp.lt.u32.totalorder %s161_s25, %s277_s1 }
  0x16   :  { %p167_p10 = pnand %p165_p9, %p162_p8 }
  0x18   :  { %170 = shalt.err (!%p167_p10)
}
  0x19   :  { %s171_s30 = scalar_lea.vmem %s233_s12, 128  ;;  %p176_p12 = scmp.lt.s32.totalorder %s233_s12, %s233_s12 }
  0x1a   :  { %p172_p11 = scmp.ne.s32.totalorder %s233_s12, %s171_s30  ;;  %p177_p13 = scmp.lt.s32.totalorder %s171_s30, %s171_s30 }
  0x1c   :  { %p178_p0 = por %p177_p13, %p176_p12 }
  0x1e   :  { %p179_p1 = pnand %p178_p0, %p172_p11 }
  0x20   :  { %182 = shalt.err (!%p179_p1)
}
  0x21   :  { %s213_s0 = smov 64   ;;  %s214_s3 = smov 4  }
  0x22   :  { %31 = dma.hbm_to_vmem [thread:$0]  %s277_s1, 128, %s233_s12, [#allocation6], %s213_s0, %s213_s0, %s214_s3  }
  0x23   :  { %205 = dma.done.wait [#allocation3], 128  }
  0x24   :  { %206 = vsyncadd [#allocation3], 4294967168 }
  0x25   :  { %207 = dma.done.wait [#allocation6], 128  }
  0x26   :  { %208 = vsyncadd [#allocation6], 4294967168  ;;  %v215_v0 = vmov 0.0   ;;  %vm216_vm0 = vmmov 0   ;;  %vm48_vm1 = vcmask 261120   ;;  %v136_v1 = vld [vmem:[#allocation5] sm:$0xff]  }
  0x27   :  { %123 = vmatprep.subr.bf16.mxu0 %v215_v0  ;;  %125 = vmatprep.mubr.msk.bf16.mxu0 %vm216_vm0, %v215_v0  ;;  %v39_v2 = vld [vmem:[#allocation2] sm:$0xff]  ;;  %v53_v3 = vsel %vm48_vm1, %v136_v1, 0  ;;  %s217_s1 = smov [#allocation7]   ;;  %vm101_vm2 = vcmask 130048  }
  0x28   :  { %v95_v4 = vmul.f32 %v39_v2, %v39_v2  ;;  %124 = vmatpush3.bf16.xpose.msra.mxu0 %v53_v3  ;;  %v40_v6 = vpack.c.bf16 %v39_v2, %v39_v2  ;;  %s109_s6 = sshll.u32 %s217_s1, 4  ;;  %s110_s6 = int_to_ptr.vmem [resolvable:$true] %s109_s6 }
  0x29   :  { %s183_s7 = scalar_lea.vmem %s110_s6, 128  ;;  %p188_p3 = scmp.lt.s32.totalorder %s110_s6, %s110_s6 }
  0x2a   :  { %v96_v5 = vsel %vm48_vm1, %v95_v4, 0.0  ;;  %p184_p2 = scmp.ne.s32.totalorder %s110_s6, %s183_s7  ;;  %p189_p4 = scmp.lt.s32.totalorder %s183_s7, %s183_s7 }
  0x2b   :  { %97 = vadd.xlane.f32.xlu0 %v96_v5 }
  0x2c   :  { %p190_p5 = por %p189_p4, %p188_p3 }
  0x2e   :  { %p191_p6 = pnand %p190_p5, %p184_p2 }
  0x2f   :  { %126 = vmatmul.mubr.msk.bf16.vlgmr.msra.gmra.mrb[0].mxu0 %vm48_vm1, %v40_v6 }
  0xb8   :  { %v98_v7 = vpop.xlane.xlu0 %97 }
  0xb9   :  { %137 = vrsqrt.f32 %v98_v7 }
  0xc3   :  { %v138_v8 = vpop.eup %137 }
 0x102   :  { %v89_v9 = vpop.f32.mrb[0].mxu0 }
 0x103   :  { %v100_v10 = vmul.f32 %v138_v8, %v89_v9  ;;  %v127_v11 = vpop.f32.mrb[1].mxu0 }
 0x104   :  { %v92_v12 = vpop.f32.mrb[2].mxu0 }
 0x105   :  { %v128_v13 = vpop.f32.mrb[3].mxu0  ;;  %102 = vst.msk [vmem:[#allocation7] sm:$0xff] %vm101_vm2, %v100_v10 }
 0x106   :  { %194 = shalt.err (!%p191_p6)
}
 0x107   :  { %s195_s10 = scalar_lea.hbm %s278_s2, 128 }
 0x108   :  { %p196_p7 = scmp.ne.s32.totalorder %s278_s2, %s195_s10  ;;  %p199_p8 = scmp.lt.u32.totalorder %s195_s10, %s278_s2 }
 0x10a   :  { %p201_p9 = pnand %p199_p8, %p196_p7 }
 0x10c   :  { %204 = shalt.err (!%p201_p9)
}
 0x10d   :  { %112 = dma.vmem_to_hbm [thread:$0]  %s110_s6, 128, %s278_s2, [#allocation4]  }
 0x10e   :  { %209 = dma.done.wait [#allocation4], 128  }
 0x10f   :  { %210 = vsyncadd [#allocation4], 4294967168 }
 0x110   :  { %116 = vsyncpa [#allocation3], 1 }
 0x111   :  { %117 = vsyncpa [#allocation6], 1 }
 0x112   :  { %118 = vsyncpa [#allocation4], 1 }

</bundles_post_ra>
